<compile_context>
chip_gen: v6e
topology: v6e:2x2x1
jax: 0.10.0
libtpu: 0.0.40
codegen_flags: <defaults>
</compile_context>

<pallas_src>
import numpy as np
import jax
import jax.numpy as jnp
from jax.experimental import pallas as pl

DETECTION_INPUT_LENGTH = 128.0


def generate_handtracker_anchors():
    """Deterministic SSD-style anchors for a 128x128 input (896 anchors, (cx,cy,w,h))."""
    anchors = []
    # stride 8 -> 16x16 grid, 2 anchors/cell ; stride 16 -> 8x8 grid, 6 anchors/cell
    for grid, repeats in [(16, 2), (8, 6)]:
        for gy in range(grid):
            for gx in range(grid):
                cx = (gx + 0.5) / grid
                cy = (gy + 0.5) / grid
                for _ in range(repeats):
                    anchors.append([cx, cy, 1.0, 1.0])
    return np.asarray(anchors, dtype=np.float32)


def _make_plus_anchor_center():
    pac = np.array(
        [[1, 0, 0, 0, 1, 0, 1, 0, 1, 0, 1, 0, 1, 0, 1, 0, 1, 0],
         [0, 1, 0, 0, 0, 1, 0, 1, 0, 1, 0, 1, 0, 1, 0, 1, 0, 1]],
        dtype=np.float32,
    )
    return pac  # (2, 18)


def _make_output_projection():
    """G (18, 8): bbox[0:3] -> out[1:4], bbox[4:6] -> out[4:6], bbox[8:10] -> out[6:8]."""
    g = np.zeros((18, 8), dtype=np.float32)
    for c, k in [(0, 1), (1, 2), (2, 3), (4, 4), (5, 5), (8, 6), (9, 7)]:
        g[c, k] = 1.0
    return g


def best_candidate_kernel(x_ref, c_ref, o_ref):
    # x_ref: (1, N) classifier scores
    # c_ref: (8, N) per-anchor decoded output lanes:
    #        row 0 = 0, rows 1..7 = (y/128 + anchors@pac)[{0,1,2,4,5,8,9}]
    # o_ref: (8, 1)
    s = x_ref[...]                                                  # (1, N)
    n = s.shape[1]

    # max + first-occurrence argmax, fully vectorized (lane iota / compare / min)
    m2d = jnp.max(s, axis=1, keepdims=True)                         # (1, 1)
    lane_idx = jax.lax.broadcasted_iota(jnp.int32, s.shape, 1)      # (1, N)
    best_id = jnp.min(jnp.where(s == m2d, lane_idx, n),
                      axis=1, keepdims=True)                        # (1, 1) int32
    one_hot = (lane_idx == best_id).astype(jnp.float32)             # (1, N)

    # sigmoid of the best score (EUP exp + a divide)
    score = 1.0 / (1.0 + jnp.exp(-m2d))                             # (1, 1)

    # Best-row select: broadcast multiply over sublanes + one lane reduce (VPU+XLU).
    col8 = jnp.sum(c_ref[...] * one_hot, axis=1, keepdims=True)     # (8, 1)

    # Add the sigmoid score into output lane 0 (row 0 of the table is all zeros).
    sub_idx = jax.lax.broadcasted_iota(jnp.int32, (8, 1), 0)
    o_ref[...] = col8 + jnp.where(sub_idx == 0, score, jnp.float32(0.0))


def detection_best_candidate(x, y, table8_t, g_scaled_t):
    """x: (1, N) scores, y: (1, N, 18) raw boxes -> (8,) decoded best candidate.

    table8_t:   ((anchors_xy @ plus_anchor_center) @ G).T, shape (8, N)  [constant]
    g_scaled_t: G.T / DETECTION_INPUT_LENGTH,               shape (8, 18) [constant]
    """
    n = x.shape[1]
    y2d = y.reshape(n, 18).astype(jnp.float32)                      # free view

    # Lane-dense (8, N) decode table.  Exact: G is 0/1 with a single nonzero per
    # output row and 1/128 is a power of two; HIGHEST avoids a lossy bf16 pass.
    yg_t = jnp.einsum("kc,nc->kn", g_scaled_t, y2d,
                      precision=jax.lax.Precision.HIGHEST)          # (8, N)
    candidates = yg_t + table8_t                                    # (8, N)

    out = pl.pallas_call(
        best_candidate_kernel,
        out_shape=jax.ShapeDtypeStruct((8, 1), jnp.float32),
    )(x.astype(jnp.float32), candidates)
    return out.reshape(8)


def reference(x, y, anchors_xy, pac):
    best = jnp.argmax(x)
    score = jax.nn.sigmoid(x[0, best])
    bbox = y[0, best] / DETECTION_INPUT_LENGTH + anchors_xy[best] @ pac
    return jnp.concatenate([score[None], bbox[0:3], bbox[4:6], bbox[8:10]])


if __name__ == "__main__":
    anchors = generate_handtracker_anchors()              # (896, 4)
    anchors_xy_np = anchors[:, :2]                         # (896, 2)
    pac_np = _make_plus_anchor_center()                    # (2, 18)
    g_np = _make_output_projection()                       # (18, 8)

    # Compile-time constants, stored lane-dense (transposed).
    table8_t_np = ((anchors_xy_np @ pac_np) @ g_np).T.astype(np.float32)   # (8, 896)
    g_scaled_t_np = (g_np.T / DETECTION_INPUT_LENGTH).astype(np.float32)   # (8, 18)

    table8_t = jnp.asarray(table8_t_np)
    g_scaled_t = jnp.asarray(g_scaled_t_np)
    anchors_xy = jnp.asarray(anchors_xy_np)
    pac = jnp.asarray(pac_np)

    n = anchors.shape[0]                                   # 896
    key = jax.random.PRNGKey(0)
    kx, ky = jax.random.split(key)
    x = jax.random.normal(kx, (1, n), dtype=jnp.float32) * 4.0        # classifier scores
    y = jax.random.normal(ky, (1, n, 18), dtype=jnp.float32) * 20.0   # raw box regressions

    fn = jax.jit(detection_best_candidate)
    out = jax.block_until_ready(fn(x, y, table8_t, g_scaled_t))

    ref = jax.block_until_ready(reference(x, y, anchors_xy, pac))
    np.testing.assert_allclose(np.asarray(out), np.asarray(ref), rtol=1e-5, atol=1e-5)

    print("KERNEL_OK")
</pallas_src>

<mosaic_0001>
module attributes {stable_mosaic.version = 11 : i64} {
  func.func @best_candidate_kernel(%arg0: memref<1x896xf32, #tpu.memory_space<vmem>>, %arg1: memref<8x896xf32, #tpu.memory_space<vmem>>, %arg2: memref<8x1xf32, #tpu.memory_space<vmem>>) attributes {dimension_semantics = [], scalar_prefetch = 0 : i64, scratch_operands = 0 : i64, tpu.core_type = #tpu.core_type<tc>} {
    %c0 = arith.constant 0 : index
    %c0_0 = arith.constant 0 : index
    %0 = vector.load %arg0[%c0, %c0_0] : memref<1x896xf32, #tpu.memory_space<vmem>>, vector<1x896xf32>
    %cst = arith.constant dense<0xFF800000> : vector<1xf32>
    %1 = vector.multi_reduction <maximumf>, %0, %cst [1] : vector<1x896xf32> to vector<1xf32>
    %2 = vector.shape_cast %1 : vector<1xf32> to vector<1x1xf32>
    %3 = tpu.iota {dimensions = array<i32: 1>} : vector<1x896xi32>
    %4 = vector.broadcast %2 : vector<1x1xf32> to vector<1x896xf32>
    %5 = arith.cmpf oeq, %0, %4 : vector<1x896xf32>
    %c896_i32 = arith.constant 896 : i32
    %6 = vector.broadcast %c896_i32 : i32 to vector<1x896xi32>
    %7 = arith.select %5, %3, %6 : vector<1x896xi1>, vector<1x896xi32>
    %cst_1 = arith.constant dense<2147483647> : vector<1xi32>
    %8 = vector.multi_reduction <minsi>, %7, %cst_1 [1] : vector<1x896xi32> to vector<1xi32>
    %9 = vector.shape_cast %8 : vector<1xi32> to vector<1x1xi32>
    %10 = vector.broadcast %9 : vector<1x1xi32> to vector<1x896xi32>
    %11 = arith.cmpi eq, %3, %10 : vector<1x896xi32>
    %12 = arith.extui %11 : vector<1x896xi1> to vector<1x896xi32>
    %13 = arith.sitofp %12 : vector<1x896xi32> to vector<1x896xf32>
    %cst_2 = arith.constant 0.000000e+00 : f32
    %14 = vector.broadcast %cst_2 : f32 to vector<1x1xf32>
    %15 = arith.subf %14, %2 : vector<1x1xf32>
    %16 = math.exp %15 : vector<1x1xf32>
    %cst_3 = arith.constant 1.000000e+00 : f32
    %17 = vector.broadcast %cst_3 : f32 to vector<1x1xf32>
    %18 = arith.addf %17, %16 : vector<1x1xf32>
    %cst_4 = arith.constant 1.000000e+00 : f32
    %19 = vector.broadcast %cst_4 : f32 to vector<1x1xf32>
    %20 = arith.divf %19, %18 : vector<1x1xf32>
    %c0_5 = arith.constant 0 : index
    %c0_6 = arith.constant 0 : index
    %21 = vector.load %arg1[%c0_5, %c0_6] : memref<8x896xf32, #tpu.memory_space<vmem>>, vector<8x896xf32>
    %22 = vector.broadcast %13 : vector<1x896xf32> to vector<8x896xf32>
    %23 = arith.mulf %21, %22 : vector<8x896xf32>
    %cst_7 = arith.constant dense<0.000000e+00> : vector<8xf32>
    %24 = vector.multi_reduction <add>, %23, %cst_7 [1] : vector<8x896xf32> to vector<8xf32>
    %25 = vector.shape_cast %24 : vector<8xf32> to vector<8x1xf32>
    %26 = tpu.iota {dimensions = array<i32: 0>} : vector<8x1xi32>
    %c0_i32 = arith.constant 0 : i32
    %27 = vector.broadcast %c0_i32 : i32 to vector<8x1xi32>
    %28 = arith.cmpi eq, %26, %27 : vector<8x1xi32>
    %cst_8 = arith.constant 0.000000e+00 : f32
    %29 = vector.shape_cast %20 : vector<1x1xf32> to vector<1x1xf32>
    %30 = vector.broadcast %29 : vector<1x1xf32> to vector<8x1xf32>
    %31 = vector.broadcast %cst_8 : f32 to vector<8x1xf32>
    %32 = arith.select %28, %30, %31 : vector<8x1xi1>, vector<8x1xf32>
    %33 = arith.addf %25, %32 : vector<8x1xf32>
    %c0_9 = arith.constant 0 : index
    %c0_10 = arith.constant 0 : index
    %34 = vector.load %arg2[%c0_9, %c0_10] : memref<8x1xf32, #tpu.memory_space<vmem>>, vector<8x1xf32>
    tpu.vector_store %arg2[%c0_9, %c0_10], %33 {strides = array<i32>} : memref<8x1xf32, #tpu.memory_space<vmem>>, vector<8x1xf32>,
    return
  }
}

</mosaic_0001>

<bundles_post_ra>
// kernel: detection_best_candidate.1
= control target key start
LH: loop header
LB: loop body
LE: loop exit
PB: predicated region body
PF: predicated region fallthrough
CT: control target
= control target key end

     0   :  { %v13_v0 = vlaneseq  ;;  %vm48_vm0 = vcmask 1040384   ;;  %v294_v31 = vmov 1966171168   ;;  %s414_s0 = inlined_call_operand.vmem [shape: f32[1,896], index: 0, kind: input, shape index: {}]   ;;  %s415_s1 = inlined_call_operand.vmem [shape: f32[8,896], index: 1, kind: input, shape index: {}]   ;;  %s416_s2 = inlined_call_operand.vmem [shape: f32[8,1], index: 2, kind: output, shape index: {}]  }
   0x1   :  { %v11_v2 = vld [vmem:[%s414_s0] sm:$0xff]  ;;  %v83_v32 = vunpack.c.l.s4 %v294_v31 }
   0x2   :  { %v311_v1 = vshrl.u32 %v13_v0, 7  ;;  %v333_v30 = vand.u32 127, %v13_v0  ;;  %v216_v31 = vld [vmem:[%s415_s1] sm:$0xff] }
   0x3   :  { %v84_v34 = vunpack.c.0.s8 %v83_v32 }
   0x4   :  { %v317_v3 = vsub.s32 0, %v311_v1  ;;  %v19_v4 = vsub.s32 1, %v311_v1  ;;  %v23_v5 = vsub.s32 2, %v311_v1  ;;  %v27_v6 = vsub.s32 3, %v311_v1 }
   0x5   :  { %v31_v7 = vsub.s32 4, %v311_v1  ;;  %v35_v8 = vsub.s32 5, %v311_v1  ;;  %v39_v9 = vsub.s32 6, %v311_v1  ;;  %v336_v33 = vadd.s32 128, %v333_v30 }
   0x6   :  { %v16_v10 = vrot.slane %v11_v2, %v317_v3  ;;  %v20_v11 = vrot.slane %v11_v2, %v19_v4  ;;  %v24_v12 = vrot.slane %v11_v2, %v23_v5  ;;  %v28_v13 = vrot.slane %v11_v2, %v27_v6 }
   0x7   :  { %v32_v14 = vrot.slane %v11_v2, %v31_v7  ;;  %v36_v15 = vrot.slane %v11_v2, %v35_v8  ;;  %v40_v16 = vrot.slane %v11_v2, %v39_v9  ;;  %v339_v35 = vadd.s32 256, %v333_v30 }
   0x8   :  { %v49_v17 = vsel %vm48_vm0, %v16_v10, -inf  ;;  %v50_v18 = vsel %vm48_vm0, %v20_v11, -inf  ;;  %v51_v19 = vsel %vm48_vm0, %v24_v12, -inf  ;;  %v52_v20 = vsel %vm48_vm0, %v28_v13, -inf }
   0x9   :  { %v53_v21 = vsel %vm48_vm0, %v32_v14, -inf  ;;  %v55_v22 = vsel %vm48_vm0, %v36_v15, -inf  ;;  %v57_v23 = vsel %vm48_vm0, %v40_v16, -inf  ;;  %v342_v36 = vadd.s32 384, %v333_v30 }
   0xa   :  { %v54_v24 = vmax.f32 %v49_v17, %v53_v21  ;;  %v56_v25 = vmax.f32 %v50_v18, %v55_v22  ;;  %v58_v26 = vmax.f32 %v51_v19, %v57_v23  ;;  %v345_v37 = vadd.s32 512, %v333_v30 }
   0xb   :  { %v348_v38 = vadd.s32 640, %v333_v30  ;;  %v351_v39 = vadd.s32 768, %v333_v30  ;;  %v79_v40 = vcombine.low %v333_v30, %v336_v33  ;;  %v80_v41 = vcombine.low %v339_v35, %v342_v36 }
   0xc   :  { %v59_v27 = vmax.f32 %v54_v24, %v56_v25  ;;  %v60_v28 = vmax.f32 %v58_v26, %v52_v20  ;;  %v87_v43 = vsub.s32 %v84_v34, %v311_v1  ;;  %v295_v25 = vmov 0.0  }
   0xd   :  { %v81_v42 = vcombine.low %v345_v37, %v348_v38 }
   0xe   :  { %v61_v29 = vmax.f32 %v59_v27, %v60_v28  ;;  %v88_v44 = vrot.slane %v79_v40, %v87_v43  ;;  %v95_v45 = vrot.slane %v80_v41, %v87_v43  ;;  %v109_v47 = vrot.slane %v351_v39, %v87_v43 }
   0xf   :  { %v102_v46 = vrot.slane %v81_v42, %v87_v43 }
  0x10   :  { %62 = vmax.xlane.f32.xlu0 %v61_v29  ;;  %v110_v48 = vcombine.low %v88_v44, %v95_v45 }
  0x11   :  { %v111_v49 = vcombine.low %v102_v46, %v109_v47  ;;  %v220_v47 = vld [vmem:[%s415_s1 + $0x20] sm:$0xff] }
  0x12   :  { %v118_v50 = vrot.slane %v110_v48, %v87_v43 }
  0x13   :  { %v125_v51 = vrot.slane %v111_v49, %v87_v43 }
  0x15   :  { %v126_v52 = vcombine.low %v118_v50, %v125_v51  ;;  %v221_v50 = vld [vmem:[%s415_s1 + $0x28] sm:$0xff] }
  0x99   :  { %v361_v53 = vpop.xlane.xlu0 %62 }
  0x9a   :  { %v76_v54 = vrot.slane %v361_v53, %v317_v3 }
  0x9c   :  { %vm78_vm1 = vcmp.eq.f32.partialorder %v11_v2, %v76_v54 }
  0x9d   :  { %v127_v55 = vsel %vm78_vm1, %v126_v52, 896  ;;  %vm275_vm1 = vcmask 7168  }
  0x9e   :  { %v131_v56 = vrot.slane %v127_v55, %v317_v3  ;;  %v135_v57 = vrot.slane %v127_v55, %v19_v4  ;;  %v139_v58 = vrot.slane %v127_v55, %v23_v5  ;;  %v147_v59 = vrot.slane %v127_v55, %v31_v7 }
  0x9f   :  { %v151_v60 = vrot.slane %v127_v55, %v35_v8  ;;  %v155_v61 = vrot.slane %v127_v55, %v39_v9  ;;  %v143_v62 = vrot.slane %v127_v55, %v27_v6  ;;  %v222_v55 = vld [vmem:[%s415_s1 + $0x30] sm:$0xff] }
  0xa0   :  { %v156_v63 = vsel %vm48_vm0, %v131_v56, 2147483647  ;;  %v157_v0 = vsel %vm48_vm0, %v135_v57, 2147483647  ;;  %v158_v10 = vsel %vm48_vm0, %v139_v58, 2147483647 }
  0xa1   :  { %v160_v11 = vsel %vm48_vm0, %v147_v59, 2147483647  ;;  %v163_v12 = vsel %vm48_vm0, %v151_v60, 2147483647  ;;  %v166_v2 = vsel %vm48_vm0, %v155_v61, 2147483647 }
  0xa2   :  { %vm161_vm2 = vcmp.lt.s32.totalorder %v156_v63, %v160_v11  ;;  %vm164_vm3 = vcmp.lt.s32.totalorder %v157_v0, %v163_v12  ;;  %vm167_vm4 = vcmp.lt.s32.totalorder %v158_v10, %v166_v2  ;;  %v159_v7 = vsel %vm48_vm0, %v143_v62, 2147483647 }
  0xa3   :  { %v162_v4 = vsel %vm161_vm2, %v156_v63, %v160_v11  ;;  %v165_v5 = vsel %vm164_vm3, %v157_v0, %v163_v12  ;;  %v168_v6 = vsel %vm167_vm4, %v158_v10, %v166_v2  ;;  %v210_v61 = vsub.f32 0.0, %v361_v53 }
  0xa4   :  { %vm169_vm5 = vcmp.lt.s32.totalorder %v162_v4, %v165_v5  ;;  %vm171_vm6 = vcmp.lt.s32.totalorder %v168_v6, %v159_v7  ;;  %vm268_vm0 = vcmp.eq.s32.totalorder %v311_v1, 0 }
  0xa5   :  { %v170_v8 = vsel %vm169_vm5, %v162_v4, %v165_v5  ;;  %v172_v9 = vsel %vm171_vm6, %v168_v6, %v159_v7  ;;  %v211_v62 = vmul.f32 1.442695, %v210_v61 }
  0xa6   :  { %vm173_vm7 = vcmp.lt.s32.totalorder %v170_v8, %v172_v9 }
  0xa7   :  { %v174_v13 = vsel %vm173_vm7, %v170_v8, %v172_v9  ;;  %290 = vpow2.f32 %v211_v62 }
  0xa8   :  { %v176_v14 = vshra.s32 %v174_v13, 16  ;;  %v175_v16 = vand.u32 65535, %v174_v13 }
  0xaa   :  { %v178_v15 = vcvt.s32.f32 %v176_v14  ;;  %v177_v18 = vcvt.s32.f32 %v175_v16 }
  0xac   :  { %179 = vmin.xlane.f32.xlu0 %v178_v15 }
  0xb4   :  { %v291_v63 = vpop.eup %290 }
  0xb5   :  { %v213_v0 = vadd.f32 1.0, %v291_v63 }
  0xb7   :  { %292 = vrcp.f32 %v213_v0 }
  0xc4   :  { %v293_v10 = vpop.eup %292 }
  0xc5   :  { %v272_v11 = vrot.slane %v293_v10, %v317_v3 }
  0xc7   :  { %v273_v2 = vsel %vm268_vm0, %v272_v11, 0.0 }
 0x135   :  { %v180_v17 = vpop.xlane.xlu0 %179 }
 0x136   :  { %vm181_vm8 = vcmp.eq.f32.partialorder %v178_v15, %v180_v17  ;;  %v186_v20 = vcvt.f32.s32 %v180_v17 }
 0x137   :  { %v182_v19 = vsel %vm181_vm8, %v177_v18, inf }
 0x138   :  { %183 = vmin.xlane.f32.xlu1 %v182_v19  ;;  %v187_v22 = vshll.u32 %v186_v20, 16 }
 0x1c1   :  { %v184_v21 = vpop.xlane.xlu1 %183 }
 0x1c2   :  { %v185_v23 = vcvt.f32.s32 %v184_v21 }
 0x1c4   :  { %v188_v24 = vadd.s32 %v187_v22, %v185_v23 }
 0x1c6   :  { %vm189_vm9 = vcmp.eq.s32.totalorder %v333_v30, %v188_v24  ;;  %vm190_vm10 = vcmp.eq.s32.totalorder %v336_v33, %v188_v24  ;;  %vm191_vm11 = vcmp.eq.s32.totalorder %v339_v35, %v188_v24  ;;  %vm192_vm12 = vcmp.eq.s32.totalorder %v342_v36, %v188_v24  ;;  %v217_v30 = vld [vmem:[%s415_s1 + $0x8] sm:$0xff]  ;;  %v218_v35 = vld [vmem:[%s415_s1 + $0x10] sm:$0xff] }
 0x1c7   :  { %vm193_vm13 = vcmp.eq.s32.totalorder %v345_v37, %v188_v24  ;;  %v281_v26 = vsel %vm189_vm9, 1.0, %v295_v25  ;;  %v282_v27 = vsel %vm190_vm10, 1.0, %v295_v25  ;;  %v283_v28 = vsel %vm191_vm11, 1.0, %v295_v25 }
 0x1c8   :  { %v284_v29 = vsel %vm192_vm12, 1.0, %v295_v25  ;;  %vm194_vm14 = vcmp.eq.s32.totalorder %v348_v38, %v188_v24  ;;  %v226_v32 = vrot.slane %v281_v26, %v317_v3  ;;  %v230_v33 = vrot.slane %v282_v27, %v317_v3  ;;  %v219_v38 = vld [vmem:[%s415_s1 + $0x18] sm:$0xff] }
 0x1c9   :  { %v285_v34 = vsel %vm193_vm13, 1.0, %v295_v25  ;;  %v234_v36 = vrot.slane %v283_v28, %v317_v3  ;;  %vm195_vm15 = vcmp.eq.s32.totalorder %v351_v39, %v188_v24  ;;  %v238_v37 = vrot.slane %v284_v29, %v317_v3 }
 0x1ca   :  { %v251_v40 = vmul.f32 %v226_v32, %v216_v31  ;;  %v252_v41 = vmul.f32 %v230_v33, %v217_v30  ;;  %v286_v42 = vsel %vm194_vm14, 1.0, %v295_v25  ;;  %v242_v43 = vrot.slane %v285_v34, %v317_v3 }
 0x1cb   :  { %v253_v44 = vmul.f32 %v234_v36, %v218_v35  ;;  %v287_v46 = vsel %vm195_vm15, 1.0, %v295_v25  ;;  %v246_v39 = vrot.slane %v286_v42, %v317_v3  ;;  %v254_v48 = vmul.f32 %v238_v37, %v219_v38 }
 0x1cc   :  { %v258_v45 = vadd.f32 %v252_v41, %v251_v40  ;;  %v250_v51 = vrot.slane %v287_v46, %v317_v3  ;;  %v255_v52 = vmul.f32 %v242_v43, %v220_v47 }
 0x1cd   :  { %v256_v56 = vmul.f32 %v246_v39, %v221_v50 }
 0x1ce   :  { %v259_v49 = vadd.f32 %v258_v45, %v253_v44  ;;  %v257_v58 = vmul.f32 %v250_v51, %v222_v55 }
 0x1d0   :  { %v260_v54 = vadd.f32 %v259_v49, %v254_v48 }
 0x1d2   :  { %v261_v57 = vadd.f32 %v260_v54, %v255_v52 }
 0x1d4   :  { %v262_v59 = vadd.f32 %v261_v57, %v256_v56 }
 0x1d6   :  { %v263_v60 = vadd.f32 %v262_v59, %v257_v58 }
 0x1d8   :  { %264 = vadd.xlane.f32.xlu1 %v263_v60 }
 0x261   :  { %v265_v12 = vpop.xlane.xlu1 %264 }
 0x262   :  { %v274_v4 = vadd.f32 %v273_v2, %v265_v12 }
 0x264   :  { %276 = vst.msk [vmem:[%s416_s2] sm:$0xff] %vm275_vm1, %v274_v4 }

</bundles_post_ra>
